<compile_context>
chip_gen: v7x
topology: tpu7x:2x2x1
jax: 0.10.0
libtpu: 0.0.40
codegen_flags: <defaults>
</compile_context>

<pallas_src>
import functools

import jax
import jax.numpy as jnp
from jax.experimental import pallas as pl
from jax.experimental.pallas import tpu as pltpu


def _round_up(v: int, m: int) -> int:
    return ((v + m - 1) // m) * m


# ---------------------------------------------------------------------------
# Fused MLP kernel: refs = (x_ref, w0_ref, b0_ref, w1_ref, b1_ref, ..., o_ref)
# The layer loop is statically unrolled; activations never leave vregs/VMEM.
# ---------------------------------------------------------------------------
def _mlp_kernel(*refs, relu_flags, compute_dtype):
    x_ref = refs[0]
    o_ref = refs[-1]
    n_layers = len(relu_flags)

    # fp32 path: exact (HIGHEST) MXU matmul, faithful to the fp32 nn.Module.
    # bf16 path: bf16 MXU inputs, fp32 accumulation (full MXU rate).
    exact = compute_dtype == jnp.float32
    precision = jax.lax.Precision.HIGHEST if exact else None

    h = x_ref[...].astype(compute_dtype)
    for i in range(n_layers):                              # statically unrolled
        w = refs[1 + 2 * i][...]                           # (K, N_p), lane-dense
        b = refs[2 + 2 * i][...].astype(jnp.float32)       # (1, N_p), row-broadcast
        h = jnp.dot(h, w, preferred_element_type=jnp.float32,
                    precision=precision) + b
        if relu_flags[i]:
            h = jnp.maximum(h, 0.0)
        if i + 1 < n_layers:
            h = h.astype(compute_dtype)                    # no-op for fp32 path
    o_ref[...] = h.astype(o_ref.dtype)                     # single lane-dense store


# ---------------------------------------------------------------------------
# Parameter construction (mirrors MappingModel.__init__ / nn.Linear init)
# ---------------------------------------------------------------------------
def init_linear_params(key, in_features, out_features):
    """Deterministic init mirroring nn.Linear's uniform(-1/sqrt(in), 1/sqrt(in))."""
    kw, kb = jax.random.split(key)
    bound = 1.0 / jnp.sqrt(jnp.float32(in_features))
    # Stored already transposed: (in, out) so the kernel does y = x @ W^T + b.
    w_t = jax.random.uniform(kw, (in_features, out_features), jnp.float32,
                             minval=-bound, maxval=bound)
    b = jax.random.uniform(kb, (1, out_features), jnp.float32,
                           minval=-bound, maxval=bound)
    return w_t, b


def build_mapping_model_params(key, dims, nlayers=1, units=128):
    """List of (w_t, b, apply_relu) matching MappingModel.__init__ (prints nlayers)."""
    print(nlayers)  # MappingModel.__init__ prints nlayers
    if nlayers == 1:
        shapes = [(dims, dims, False)]
    elif nlayers == 2:
        shapes = [(dims, units, True), (units, dims, False)]
    else:
        shapes = ([(dims, units, True)]
                  + [(units, units, True)] * (nlayers - 2)
                  + [(units, dims, False)])
    keys = jax.random.split(key, len(shapes))
    layers = []
    for k, (fin, fout, relu) in zip(keys, shapes):
        w_t, b = init_linear_params(k, fin, fout)
        layers.append((w_t, b, relu))
    return layers


def pad_mapping_model_params(params, compute_dtype=jnp.float32):
    """Call ONCE at init (hoisted out of the forward pass).

    Pads every layer's OUTPUT width (and the input width of layers > 0) to a
    multiple of 128 lanes and casts to compute_dtype. The first layer's K stays
    at the logical `dims` so x never needs lane-padding in HBM.
    Zero padding keeps the math exact: padded output columns are 0, ReLU(0)=0,
    and padded input rows of the next weight contribute nothing.
    Returns (flat tuple (w0,b0,w1,b1,...), relu_flags, logical out_dim).
    """
    flat = []
    relu_flags = []
    for li, (w_t, b, relu) in enumerate(params):
        fin, fout = w_t.shape
        fin_p = fin if li == 0 else _round_up(fin, 128)
        fout_p = _round_up(fout, 128)
        w_p = jnp.zeros((fin_p, fout_p), compute_dtype).at[:fin, :fout].set(
            w_t.astype(compute_dtype))
        b_p = jnp.zeros((1, fout_p), compute_dtype).at[:, :fout].set(
            b.astype(compute_dtype))
        flat += [w_p, b_p]
        relu_flags.append(bool(relu))
    out_dim = params[-1][0].shape[1]
    return tuple(flat), tuple(relu_flags), out_dim


def _choose_tm(M: int, tm_max: int) -> int:
    """Batch tile: full batch when tiny; otherwise >=2 tiles (multiple of 8,
    <= tm_max) so the 'parallel' grid axis can shard across v7x's two TCs while
    keeping row-padding waste under one tile."""
    if M <= 8:
        return M
    half = -(-M // 2)
    return min(tm_max, _round_up(half, 8))


# ---------------------------------------------------------------------------
# Fused forward pass (jitted: pad, pallas_call and slice dispatch as one exe)
# ---------------------------------------------------------------------------
@functools.partial(jax.jit, static_argnames=("relu_flags", "out_dim", "tm_max"))
def mapping_model_forward(flat_params, x, *, relu_flags, out_dim, tm_max=256):
    """Forward pass of MappingModel: all Linear(+ReLU) layers in ONE pallas_call."""
    M, dims = x.shape
    out_dim_p = _round_up(out_dim, 128)
    compute_dtype = flat_params[0].dtype

    TM = _choose_tm(M, tm_max)
    M_pad = _round_up(M, TM)
    if M_pad != M:
        # Row-only padding (no 32->128 lane inflation of x in HBM).
        x = jnp.pad(x, ((0, M_pad - M), (0, 0)))

    weight_bytes = sum(int(p.size) * p.dtype.itemsize for p in flat_params)
    # Resident weights: constant block index, nothing to pipeline. Single-buffer
    # them once they are large enough to matter (guards v7x's 64 MiB VMEM).
    single_buffer_weights = weight_bytes > (8 << 20)
    w_buf_factor = 1 if single_buffer_weights else 2

    in_specs = [pl.BlockSpec((TM, dims), lambda i: (i, 0))]
    for p in flat_params:
        if single_buffer_weights:
            spec = pl.BlockSpec(p.shape, lambda i: (0, 0),
                                pipeline_mode=pl.Buffered(1))
        else:
            spec = pl.BlockSpec(p.shape, lambda i: (0, 0))
        in_specs.append(spec)
    out_specs = pl.BlockSpec((TM, out_dim_p), lambda i: (i, 0))

    # Explicit VMEM budget: resident weights (+buffering) + double-buffered
    # activation tiles + headroom; never below the 32 MiB scoped default.
    widest = max(int(p.shape[-1]) for p in flat_params)
    act_bytes = (2 * TM * dims * x.dtype.itemsize
                 + 2 * TM * out_dim_p * x.dtype.itemsize
                 + 4 * TM * widest * 4)
    vmem_limit = max(32 << 20, w_buf_factor * weight_bytes + act_bytes + (4 << 20))

    kernel = functools.partial(_mlp_kernel, relu_flags=relu_flags,
                               compute_dtype=compute_dtype)
    y_p = pl.pallas_call(
        kernel,
        out_shape=jax.ShapeDtypeStruct((M_pad, out_dim_p), x.dtype),
        grid=(M_pad // TM,),
        in_specs=in_specs,
        out_specs=out_specs,
        compiler_params=pltpu.CompilerParams(
            dimension_semantics=("parallel",),   # shards M tiles across TCs on v7x
            vmem_limit_bytes=int(vmem_limit),
        ),
    )(x, *flat_params)
    # Slice back to the logical shape under the same jit as the kernel.
    return y_p[:M, :out_dim]


# ---------------------------------------------------------------------------
def _reference_forward(params, x):
    h = x
    for w_t, b, relu in params:
        h = jnp.dot(h, w_t, precision=jax.lax.Precision.HIGHEST) + b
        if relu:
            h = jnp.maximum(h, 0.0)
    return h


if __name__ == "__main__":
    batch, dims, units = 8, 32, 128
    key = jax.random.PRNGKey(0)
    k_params, k_x = jax.random.split(key)
    x = jax.random.normal(k_x, (batch, dims), jnp.float32)

    ok = True
    for nlayers in (1, 2, 3):
        params = build_mapping_model_params(k_params, dims, nlayers=nlayers, units=units)
        ref = _reference_forward(params, x)

        # fp32 path (faithful to the fp32 nn.Module): pad/cast ONCE, jit forward.
        flat, relu_flags, out_dim = pad_mapping_model_params(params, jnp.float32)
        y = mapping_model_forward(flat, x, relu_flags=relu_flags, out_dim=out_dim)
        y = jax.block_until_ready(y)
        ok &= (y.shape == (batch, dims))
        ok &= bool(jnp.allclose(y, ref, atol=1e-5, rtol=1e-5))

        # bf16 MXU path (perf knob: bf16 inputs, fp32 accumulation, half the
        # weight DMA / VMEM); validated against the fp32 reference loosely.
        flat_bf, relu_flags_bf, out_dim_bf = pad_mapping_model_params(params, jnp.bfloat16)
        y_bf = mapping_model_forward(flat_bf, x, relu_flags=relu_flags_bf,
                                     out_dim=out_dim_bf)
        y_bf = jax.block_until_ready(y_bf)
        ok &= (y_bf.shape == (batch, dims))
        ok &= bool(jnp.allclose(y_bf, ref, atol=5e-2, rtol=5e-2))

    assert ok
    print("KERNEL_OK")
</pallas_src>

<mosaic_0001>
module attributes {stable_mosaic.version = 11 : i64} {
  func.func @_mlp_kernel(%arg0: i32, %arg1: memref<8x32xf32, #tpu.memory_space<vmem>>, %arg2: memref<32x128xf32, #tpu.memory_space<vmem>>, %arg3: memref<1x128xf32, #tpu.memory_space<vmem>>, %arg4: memref<8x128xf32, #tpu.memory_space<vmem>>) attributes {dimension_semantics = [#tpu.dimension_semantics<parallel>], iteration_bounds = array<i64: 1>, scalar_prefetch = 0 : i64, scratch_operands = 0 : i64, tpu.core_type = #tpu.core_type<tc>, window_params = [{transform_indices = @transform_0, window_bounds = array<i64: 8, 32>}, {pipeline_mode = #tpu.pipeline_mode<synchronous>, transform_indices = @transform_1, window_bounds = array<i64: 32, 128>}, {pipeline_mode = #tpu.pipeline_mode<synchronous>, transform_indices = @transform_2, window_bounds = array<i64: 1, 128>}, {transform_indices = @transform_3, window_bounds = array<i64: 8, 128>}]} {
    %c0 = arith.constant 0 : index
    %c0_0 = arith.constant 0 : index
    %0 = vector.load %arg1[%c0, %c0_0] : memref<8x32xf32, #tpu.memory_space<vmem>>, vector<8x32xf32>
    %c0_1 = arith.constant 0 : index
    %c0_2 = arith.constant 0 : index
    %1 = vector.load %arg2[%c0_1, %c0_2] : memref<32x128xf32, #tpu.memory_space<vmem>>, vector<32x128xf32>
    %c0_3 = arith.constant 0 : index
    %c0_4 = arith.constant 0 : index
    %2 = vector.load %arg3[%c0_3, %c0_4] : memref<1x128xf32, #tpu.memory_space<vmem>>, vector<1x128xf32>
    %cst = arith.constant dense<0.000000e+00> : vector<8x128xf32>
    %3 = tpu.matmul %0, %1, %cst {dimension_numbers = #tpu.dot_dimension_numbers<[1], [0], [0], [1], [0, 0, 1, 1], [], []>, precision = #tpu.contract_precision<fp32>} : vector<8x32xf32>, vector<32x128xf32>, vector<8x128xf32> -> vector<8x128xf32>
    %4 = vector.broadcast %2 : vector<1x128xf32> to vector<8x128xf32>
    %5 = arith.addf %3, %4 : vector<8x128xf32>
    %c0_5 = arith.constant 0 : index
    %c0_6 = arith.constant 0 : index
    %6 = vector.load %arg4[%c0_5, %c0_6] : memref<8x128xf32, #tpu.memory_space<vmem>>, vector<8x128xf32>
    tpu.vector_store %arg4[%c0_5, %c0_6], %5 {strides = array<i32>} : memref<8x128xf32, #tpu.memory_space<vmem>>, vector<8x128xf32>,
    return
  }
  func.func @transform_0(%arg0: i32) -> (i32, i32) {
    %c0_i32 = arith.constant 0 : i32
    %c0_i32_0 = arith.constant 0 : i32
    return %arg0, %c0_i32 : i32, i32
  }
  func.func @transform_1(%arg0: i32) -> (i32, i32) {
    %c0_i32 = arith.constant 0 : i32
    %c0_i32_0 = arith.constant 0 : i32
    %c0_i32_1 = arith.constant 0 : i32
    return %c0_i32, %c0_i32_0 : i32, i32
  }
  func.func @transform_2(%arg0: i32) -> (i32, i32) {
    %c0_i32 = arith.constant 0 : i32
    %c0_i32_0 = arith.constant 0 : i32
    %c0_i32_1 = arith.constant 0 : i32
    return %c0_i32, %c0_i32_0 : i32, i32
  }
  func.func @transform_3(%arg0: i32) -> (i32, i32) {
    %c0_i32 = arith.constant 0 : i32
    %c0_i32_0 = arith.constant 0 : i32
    return %arg0, %c0_i32 : i32, i32
  }
}

</mosaic_0001>

<bundles_post_ra>
// kernel: mapping_model_forward.1
= control target key start
LH: loop header
LB: loop body
LE: loop exit
PB: predicated region body
PF: predicated region fallthrough
CT: control target
= control target key end

     0   :  { %8 = vsyncpa [#allocation3], 0  ;;  %s880_s0 = inlined_call_operand.hbm [shape: f32[8,32], index: 0, kind: input, shape index: {}]   ;;  %s881_s1 = inlined_call_operand.hbm [shape: f32[32,128], index: 1, kind: input, shape index: {}]   ;;  %s882_s2 = inlined_call_operand.vmem [shape: f32[1,128], index: 2, kind: input, shape index: {}]   ;;  %s883_s3 = inlined_call_operand.hbm [shape: f32[8,128], index: 3, kind: output, shape index: {}]  }
   0x1   :  { %9 = vsyncpa [#allocation6], 0 }
   0x2   :  { %10 = vsyncpa [#allocation4], 0  ;;  %s782_s12 = smov [#allocation2]   ;;  %s783_s14 = smov [#allocation5]  }
   0x3   :  { %s17_s13 = sshll.u32 %s782_s12, 4  ;;  %s26_s15 = sshll.u32 %s783_s14, 4  ;;  %s18_s13 = int_to_ptr.vmem [resolvable:$true] %s17_s13  ;;  %s810_s15 = int_to_ptr.vmem [resolvable:$true] %s26_s15 }
   0x4   :  { %s710_s18 = scalar_lea.hbm %s880_s0, 128 }
   0x5   :  { %p711_p0 = scmp.ne.s32.totalorder %s880_s0, %s710_s18  ;;  %p714_p1 = scmp.lt.u32.totalorder %s710_s18, %s880_s0 }
   0x7   :  { %p716_p2 = pnand %p714_p1, %p711_p0 }
   0x9   :  { %719 = shalt.err (!%p716_p2)
}
   0xa   :  { %s720_s23 = scalar_lea.vmem %s18_s13, 128  ;;  %p725_p4 = scmp.lt.s32.totalorder %s18_s13, %s18_s13 }
   0xb   :  { %p721_p3 = scmp.ne.s32.totalorder %s18_s13, %s720_s23  ;;  %p726_p5 = scmp.lt.s32.totalorder %s720_s23, %s720_s23 }
   0xd   :  { %p727_p6 = por %p726_p5, %p725_p4 }
   0xf   :  { %p728_p7 = pnand %p727_p6, %p721_p3 }
  0x11   :  { %731 = shalt.err (!%p728_p7)
}
  0x12   :  { %20 = dma.hbm_to_vmem [thread:$0]  %s880_s0, 128, %s18_s13, [#allocation3]  }
  0x13   :  { %s732_s28 = scalar_lea.hbm %s881_s1, 512 }
  0x14   :  { %p733_p8 = scmp.ne.s32.totalorder %s881_s1, %s732_s28  ;;  %p736_p9 = scmp.lt.u32.totalorder %s732_s28, %s881_s1 }
  0x16   :  { %p738_p10 = pnand %p736_p9, %p733_p8 }
  0x18   :  { %741 = shalt.err (!%p738_p10)
}
  0x19   :  { %s742_s6 = scalar_lea.vmem %s810_s15, 512  ;;  %p747_p12 = scmp.lt.s32.totalorder %s810_s15, %s810_s15 }
  0x1a   :  { %p743_p11 = scmp.ne.s32.totalorder %s810_s15, %s742_s6  ;;  %p748_p13 = scmp.lt.s32.totalorder %s742_s6, %s742_s6 }
  0x1c   :  { %p749_p0 = por %p748_p13, %p747_p12 }
  0x1e   :  { %p750_p1 = pnand %p749_p0, %p743_p11 }
  0x20   :  { %753 = shalt.err (!%p750_p1)
}
  0x21   :  { %s784_s0 = smov 128   ;;  %s785_s7 = smov 8  }
  0x22   :  { %32 = dma.hbm_to_vmem [thread:$0]  %s881_s1, 512, %s810_s15, [#allocation6], %s784_s0, %s784_s0, %s785_s7  }
  0x23   :  { %776 = dma.done.wait [#allocation3], 128  }
  0x24   :  { %777 = vsyncadd [#allocation3], 4294967168 }
  0x25   :  { %778 = dma.done.wait [#allocation6], 512  }
  0x26   :  { %779 = vsyncadd [#allocation6], 4294966784  ;;  %v786_v0 = vmov 0.0|0.0   ;;  %vm787_vm0 = vmmov 0   ;;  %v788_v1 = vmov 0.0   ;;  %vm53_vm1 = vcmask 261120  }
  0x27   :  { %656 = vmatprep.subr.bf16.mxu1 %v786_v0  ;;  %674 = vmatprep.subr.bf16.mxu0 %v786_v0  ;;  %v42_v2 = vld [vmem:[#allocation5] sm:$0xff]  ;;  %v43_v3 = vld [vmem:[#allocation5 + $0x8] sm:$0xff]  ;;  %v44_v4 = vld [vmem:[#allocation5 + $0x10] sm:$0xff]  ;;  %s789_s11 = smov [#allocation7]  }
  0x28   :  { %598 = vmatprep.mubr.msk.f32.mxu1 %vm787_vm0, %v788_v1  ;;  %631 = vmatprep.mubr.msk.f32.mxu0 %vm787_vm0, %v788_v1  ;;  %v58_v5 = vand.u32 4294901760, %v42_v2  ;;  %v61_v6 = vand.u32 4294901760, %v43_v3  ;;  %v45_v7 = vld [vmem:[#allocation5 + $0x18] sm:$0xff]  ;;  %v64_v8 = vand.u32 4294901760, %v44_v4  ;;  %s549_s12 = sshll.u32 %s789_s11, 4  ;;  %s550_s12 = int_to_ptr.vmem [resolvable:$true] %s549_s12 }
  0x29   :  { %v41_v9 = vld [vmem:[#allocation2] sm:$0xff]  ;;  %v67_v10 = vand.u32 4294901760, %v45_v7  ;;  %s754_s13 = scalar_lea.vmem %s550_s12, 128  ;;  %p759_p3 = scmp.lt.s32.totalorder %s550_s12, %s550_s12 }
  0x2a   :  { %v55_v11 = vsel %vm53_vm1, %v41_v9, 0  ;;  %v657_v12 = vpack.c.bf16 %v61_v6, %v58_v5  ;;  %v138_v13 = vsub.f32 %v42_v2, %v58_v5  ;;  %v145_v14 = vsub.f32 %v43_v3, %v61_v6  ;;  %v559_v41 = vld [vmem:[%s882_s2] ss:$0 sm:$0xff]  ;;  %p755_p2 = scmp.ne.s32.totalorder %s550_s12, %s754_s13  ;;  %p760_p4 = scmp.lt.s32.totalorder %s754_s13, %s754_s13 }
  0x2b   :  { %v152_v15 = vsub.f32 %v44_v4, %v64_v8  ;;  %v159_v16 = vsub.f32 %v45_v7, %v67_v10  ;;  %v126_v17 = vand.u32 4294901760, %v55_v11  ;;  %v660_v18 = vpack.c.bf16 %v67_v10, %v64_v8 }
  0x2c   :  { %658 = vmatpush3.bf16.msra.mxu1 %v657_v12  ;;  %676 = vmatpush3.bf16.msra.mxu0 %v657_v12  ;;  %v139_v19 = vand.u32 4294901760, %v138_v13  ;;  %v146_v20 = vand.u32 4294901760, %v145_v14  ;;  %v669_v39 = vpack.c.bf16 %v145_v14, %v138_v13  ;;  %p761_p5 = por %p760_p4, %p759_p3 }
  0x2d   :  { %v153_v21 = vand.u32 4294901760, %v152_v15  ;;  %659 = vmatprep.subr.bf16.mxu1 %v786_v0  ;;  %677 = vmatprep.subr.bf16.mxu0 %v786_v0  ;;  %v127_v22 = vsub.f32 %v55_v11, %v126_v17  ;;  %v160_v23 = vand.u32 4294901760, %v159_v16  ;;  %v672_v40 = vpack.c.bf16 %v159_v16, %v152_v15 }
  0x2e   :  { %v140_v24 = vsub.f32 %v138_v13, %v139_v19  ;;  %v147_v25 = vsub.f32 %v145_v14, %v146_v20  ;;  %v681_v31 = vpack.c.bf16 %v146_v20, %v139_v19  ;;  %p762_p6 = pnand %p761_p5, %p755_p2 }
  0x2f   :  { %v154_v26 = vsub.f32 %v152_v15, %v153_v21  ;;  %v128_v27 = vand.u32 4294901760, %v127_v22  ;;  %v161_v28 = vsub.f32 %v159_v16, %v160_v23  ;;  %v684_v37 = vpack.c.bf16 %v160_v23, %v153_v21 }
  0x30   :  { %661 = vmatpush3.bf16.msra.mxu1 %v660_v18  ;;  %679 = vmatpush3.bf16.msra.mxu0 %v660_v18  ;;  %v141_v29 = vand.u32 4294901760, %v140_v24  ;;  %v148_v30 = vand.u32 4294901760, %v147_v25 }
  0x31   :  { %v129_v32 = vsub.f32 %v127_v22, %v128_v27  ;;  %662 = vmatprep.subr.bf16.mxu1 %v786_v0  ;;  %680 = vmatprep.subr.bf16.mxu0 %v786_v0  ;;  %v155_v34 = vand.u32 4294901760, %v154_v26  ;;  %v162_v35 = vand.u32 4294901760, %v161_v28 }
  0x32   :  { %v663_v33 = vpack.c.bf16 %v148_v30, %v141_v29 }
  0x33   :  { %v130_v36 = vand.u32 4294901760, %v129_v32  ;;  %632 = vmatmul.mubr.f32.vlgmr.msra.gmra.mrb[0].mxu0 %v128_v27  ;;  %v666_v38 = vpack.c.bf16 %v162_v35, %v155_v34 }
  0x34   :  { %682 = vmatpush3.bf16.msra.mxu0 %v681_v31  ;;  %642 = vmatprep.mubr.msk.f32.mxu0 %vm787_vm0, %v788_v1 }
  0x35   :  { %599 = vmatmul.mubr.f32.vlgmr.msra.gmra.mrb[0].mxu1 %v130_v36  ;;  %683 = vmatprep.subr.bf16.mxu0 %v786_v0 }
  0x36   :  { %664 = vmatpush3.bf16.msra.mxu1 %v663_v33  ;;  %609 = vmatprep.mubr.msk.f32.mxu1 %vm787_vm0, %v788_v1 }
  0x37   :  { %665 = vmatprep.subr.bf16.mxu1 %v786_v0 }
  0x38   :  { %685 = vmatpush3.bf16.msra.mxu0 %v684_v37 }
  0x39   :  { %686 = vmatprep.subr.bf16.mxu0 %v786_v0 }
  0x3a   :  { %667 = vmatpush3.bf16.msra.mxu1 %v666_v38 }
  0x3b   :  { %668 = vmatprep.subr.bf16.mxu1 %v786_v0  ;;  %643 = vmatmul.mubr.f32.vlgmr.msra.gmra.mrb[0].mxu0 %v126_v17 }
  0x3c   :  { %688 = vmatpush3.bf16.msra.mxu0 %v657_v12  ;;  %653 = vmatprep.mubr.msk.f32.mxu0 %vm787_vm0, %v788_v1 }
  0x3d   :  { %610 = vmatmul.mubr.f32.vlgmr.msra.gmra.mrb[0].mxu1 %v126_v17  ;;  %689 = vmatprep.subr.bf16.mxu0 %v786_v0 }
  0x3e   :  { %670 = vmatpush3.bf16.msra.mxu1 %v669_v39  ;;  %620 = vmatprep.mubr.msk.f32.mxu1 %vm787_vm0, %v788_v1 }
  0x3f   :  { %671 = vmatprep.subr.bf16.mxu1 %v786_v0 }
  0x40   :  { %691 = vmatpush3.bf16.msra.mxu0 %v660_v18 }
  0x42   :  { %673 = vmatpush3.bf16.msra.mxu1 %v672_v40 }
  0x43   :  { %654 = vmatmul.mubr.f32.vlgmr.msra.gmra.mrb[0].mxu0 %v126_v17 }
  0x45   :  { %621 = vmatmul.mubr.f32.vlgmr.msra.gmra.mrb[0].mxu1 %v127_v22 }
 0x116   :  { %v538_v42 = vpop.f32.mrb[0].mxu0 }
 0x117   :  { %v655_v43 = vpop.f32.mrb[1].mxu0 }
 0x118   :  { %v303_v44 = vpop.f32.mrb[0].mxu1 }
 0x119   :  { %v692_v45 = vadd.f32 %v559_v41, %v303_v44  ;;  %v622_v46 = vpop.f32.mrb[1].mxu1 }
 0x11b   :  { %v693_v47 = vadd.f32 %v692_v45, %v538_v42 }
 0x11d   :  { %542 = vst [vmem:[#allocation7] sm:$0xff] %v693_v47 }
 0x11e   :  { %765 = shalt.err (!%p762_p6)
}
 0x11f   :  { %s766_s2 = scalar_lea.hbm %s883_s3, 128 }
 0x120   :  { %p767_p7 = scmp.ne.s32.totalorder %s883_s3, %s766_s2  ;;  %p770_p8 = scmp.lt.u32.totalorder %s766_s2, %s883_s3 }
 0x122   :  { %p772_p9 = pnand %p770_p8, %p767_p7 }
 0x124   :  { %775 = shalt.err (!%p772_p9)
}
 0x125   :  { %552 = dma.vmem_to_hbm [thread:$0]  %s550_s12, 128, %s883_s3, [#allocation4]  }
 0x126   :  { %780 = dma.done.wait [#allocation4], 128  }
 0x127   :  { %781 = vsyncadd [#allocation4], 4294967168 }
 0x128   :  { %556 = vsyncpa [#allocation3], 1 }
 0x129   :  { %557 = vsyncpa [#allocation6], 1 }
 0x12a   :  { %558 = vsyncpa [#allocation4], 1 }

</bundles_post_ra>
